<compile_context>
chip_gen: v7x
topology: tpu7x:2x2x1
jax: 0.10.0
libtpu: 0.0.40
codegen_flags: <defaults>
</compile_context>

<pallas_src>
import math
import jax
import jax.numpy as jnp
from jax.experimental import pallas as pl
from jax.experimental.pallas import tpu as pltpu


def _round_up(x, m):
    return ((x + m - 1) // m) * m


def _cdiv(a, b):
    return -(-a // b)


def _orthogonal(key, shape, gain=1.0, dtype=jnp.float32):
    """Deterministic orthogonal init matching torch.nn.init.orthogonal_ semantics.

    `shape` is the PyTorch weight shape (out_features, in_features)."""
    rows, cols = shape
    flat = jax.random.normal(key, (rows, cols), dtype=jnp.float32)
    if rows < cols:
        flat = flat.T
    q, r = jnp.linalg.qr(flat)
    d = jnp.sign(jnp.diag(r))          # sign correction -> unique decomposition (as torch)
    q = q * d[None, :]
    if rows < cols:
        q = q.T
    return (gain * q).astype(dtype)


def _critic_kernel(x_ref, w1_ref, b1_ref, w2_ref, b2_ref, w3_ref, b3_ref, o_ref):
    w_dtype = w1_ref.dtype
    # Cast activations to the storage dtype on the VPU *inside* the kernel
    # (intentional: the bf16 path quantizes activations too, i.e. bf16 compute).
    x = x_ref[...].astype(w_dtype)

    h1 = jnp.dot(x, w1_ref[...], preferred_element_type=jnp.float32)
    h1 = jnp.maximum(h1 + b1_ref[...], 0.0)                         # relu(fc1(s_a))

    h2 = jnp.dot(h1.astype(w_dtype), w2_ref[...], preferred_element_type=jnp.float32)
    h2 = jnp.maximum(h2 + b2_ref[...], 0.0)                         # relu(fc2(q))

    # fc3 as w3 @ h2^T so the result is lane-dense (rows, tile_b).  w3 is padded
    # to 8 rows (rows 1..7 zero) so the MXU sees a sublane-aligned LHS.
    q = jax.lax.dot_general(
        w3_ref[...].astype(jnp.float32), h2,
        dimension_numbers=(((1,), (1,)), ((), ())),
        preferred_element_type=jnp.float32)                         # (8, tile_b)
    o_ref[...] = (q[0:1, :] + b3_ref[0, 0]).astype(o_ref.dtype)[None]


def critic_maddpg_forward(s_list, a_list, params, *, tile_b=2048):
    """Pallas-backed forward of Critic_MADDPG.

    s_list / a_list : lists of [B, d_i] f32 arrays (per-agent observations / actions).
    params          : w1 (Din,H), b1 (1,H), w2 (H,H1), b2 (1,H1), w3 (H1,1), b3 (1,1).
                      Weights may be float32 or bfloat16; accumulation is always f32.
    Returns q of shape [B, 1] float32.
    """
    chunks = list(s_list) + list(a_list)        # torch.cat order: all obs, then all actions
    B = int(chunks[0].shape[0])
    in_dim = sum(int(c.shape[1]) for c in chunks)

    w1, b1 = params["w1"], params["b1"]
    w2, b2 = params["w2"], params["b2"]
    w3, b3 = params["w3"], params["b3"]
    H, H1 = int(w1.shape[1]), int(w2.shape[1])
    w_dtype = w1.dtype

    # ---- weight prep: pad hidden dims to 128 lanes; fc3 weight as an 8-row slab ----
    H_pad, H1_pad = _round_up(H, 128), _round_up(H1, 128)
    w1p = jnp.pad(w1, ((0, 0), (0, H_pad - H)))
    b1p = jnp.pad(b1.reshape(1, H).astype(jnp.float32), ((0, 0), (0, H_pad - H)))
    w2p = jnp.pad(w2, ((0, H_pad - H), (0, H1_pad - H1)))
    b2p = jnp.pad(b2.reshape(1, H1).astype(jnp.float32), ((0, 0), (0, H1_pad - H1)))
    w3p = jnp.pad(w3.reshape(1, H1), ((0, 7), (0, H1_pad - H1)))    # (8, H1_pad)
    b3p = b3.reshape(1, 1).astype(jnp.float32)

    # ---- activation prep: ONE fused lane-dense slab, no wrapper-side dtype cast ----
    x = chunks[0] if len(chunks) == 1 else jnp.concatenate(chunks, axis=1)

    # ---- batch tiling ----
    row_align = 16 if w_dtype == jnp.bfloat16 else 8     # bf16 packs 2 rows / sublane
    tile_b = max(row_align, min(int(tile_b), _round_up(B, row_align)))
    tile_b = _round_up(tile_b, row_align)
    n_tiles = _cdiv(B, tile_b)
    tile_b = _round_up(_cdiv(B, n_tiles), row_align)      # minimize batch padding
    n_tiles = _cdiv(B, tile_b)
    if n_tiles == 1 and B >= 2 * row_align:               # keep >=2 tiles for v7x's 2 TCs
        tile_b = _round_up(_cdiv(B, 2), row_align)
        n_tiles = _cdiv(B, tile_b)

    # ---- VMEM guard (v7x has only 64 MiB physical VMEM) ----
    nbytes = lambda a: int(a.size) * a.dtype.itemsize
    resident = sum(nbytes(a) for a in (w1p, b1p, w2p, b2p, w3p, b3p))
    pipe = lambda tb: 2 * (tb * in_dim * x.dtype.itemsize + tb * 4)  # dbl-buffered x + out
    VMEM_BUDGET = 48 << 20
    while resident + pipe(tile_b) > VMEM_BUDGET and tile_b > row_align:
        tile_b = max(row_align, _round_up(tile_b // 2, row_align))
    n_tiles = _cdiv(B, tile_b)
    # TODO(synk): if the resident weights alone outgrow the budget (H, H1 >= ~4096 f32),
    # add a grid axis over H1 tiles for w2 instead of keeping everything resident.
    vmem_limit = int(min(max(1.25 * (resident + pipe(tile_b)) + (8 << 20), 32 << 20),
                         100 << 20))

    padded_B = n_tiles * tile_b
    if padded_B != B:
        # zero rows; math is row-independent so they cannot affect real rows and
        # are sliced away below.
        x = jnp.pad(x, ((0, padded_B - B), (0, 0)))

    const = lambda i: (0, 0)
    # TODO(synk): MATD3's twin Q-heads (and multiple agents' critics) can be stacked
    # along a leading weight/grid axis so both heads reuse the same x tiles in one call.
    out = pl.pallas_call(
        _critic_kernel,
        out_shape=jax.ShapeDtypeStruct((n_tiles, 1, tile_b), jnp.float32),
        grid=(n_tiles,),
        in_specs=[
            pl.BlockSpec((tile_b, in_dim), lambda i: (i, 0)),       # x: pipelined tiles
            pl.BlockSpec((in_dim, H_pad), const),                   # w1 (VMEM resident)
            pl.BlockSpec((1, H_pad), const),                        # b1
            pl.BlockSpec((H_pad, H1_pad), const),                   # w2
            pl.BlockSpec((1, H1_pad), const),                       # b2
            pl.BlockSpec((8, H1_pad), const),                       # w3 (8-row slab)
            pl.BlockSpec(memory_space=pltpu.MemorySpace.SMEM),      # b3 scalar
        ],
        out_specs=pl.BlockSpec((1, 1, tile_b), lambda i: (i, 0, 0)),  # lane-dense row
        compiler_params=pltpu.CompilerParams(
            dimension_semantics=("parallel",),
            vmem_limit_bytes=vmem_limit),
        cost_estimate=pl.CostEstimate(
            flops=2 * padded_B * (in_dim * H_pad + H_pad * H1_pad + 8 * H1_pad),
            transcendentals=0,
            bytes_accessed=nbytes(x) + resident + padded_B * 4),
    )(x, w1p, b1p, w2p, b2p, w3p, b3p)

    return out.reshape(padded_B, 1)[:B]


def make_params(key, in_dim, hidden_dim, hidden_dim1, use_orthogonal_init=True):
    k1, k2, k3 = jax.random.split(key, 3)
    if use_orthogonal_init:
        # PyTorch stores weight as (out, in); transpose to (in, out) for x @ W.
        w1 = _orthogonal(k1, (hidden_dim, in_dim)).T
        w2 = _orthogonal(k2, (hidden_dim1, hidden_dim)).T
        w3 = _orthogonal(k3, (1, hidden_dim1)).T
    else:
        # default nn.Linear init: U(-1/sqrt(fan_in), 1/sqrt(fan_in))
        def _uni(k, fan_in, shape):
            bound = 1.0 / math.sqrt(fan_in)
            return jax.random.uniform(k, shape, jnp.float32, -bound, bound)
        w1 = _uni(k1, in_dim, (in_dim, hidden_dim))
        w2 = _uni(k2, hidden_dim, (hidden_dim, hidden_dim1))
        w3 = _uni(k3, hidden_dim1, (hidden_dim1, 1))
    return {
        "w1": w1, "b1": jnp.zeros((1, hidden_dim), jnp.float32),
        "w2": w2, "b2": jnp.zeros((1, hidden_dim1), jnp.float32),
        "w3": w3, "b3": jnp.zeros((1, 1), jnp.float32),
    }


def _reference(s_list, a_list, params):
    s_a = jnp.concatenate(list(s_list) + list(a_list), axis=1)
    h1 = jnp.maximum(s_a @ params["w1"] + params["b1"], 0.0)
    h2 = jnp.maximum(h1 @ params["w2"] + params["b2"], 0.0)
    return h2 @ params["w3"] + params["b3"]


if __name__ == "__main__":
    # Small synthetic "args": 3 agents, obs dims [6,6,6], action dims [2,2,2],
    # hidden_dim=32, hidden_dim1=32, batch=8.
    obs_dim_n = [6, 6, 6]
    action_dim_n = [2, 2, 2]
    hidden_dim, hidden_dim1 = 32, 32
    batch = 8
    in_dim = sum(obs_dim_n) + sum(action_dim_n)

    key = jax.random.PRNGKey(0)
    kp, *ks = jax.random.split(key, 1 + 2 * len(obs_dim_n))
    params = make_params(kp, in_dim, hidden_dim, hidden_dim1, use_orthogonal_init=True)

    s_list = [jax.random.normal(ks[i], (batch, d), jnp.float32)
              for i, d in enumerate(obs_dim_n)]
    a_list = [jax.random.normal(ks[len(obs_dim_n) + i], (batch, d), jnp.float32)
              for i, d in enumerate(action_dim_n)]

    # --- f32 run -----------------------------------------------------------------
    q = jax.block_until_ready(critic_maddpg_forward(s_list, a_list, params))
    q_ref = _reference(s_list, a_list, params)
    assert q.shape == (batch, 1)
    assert jnp.allclose(q, q_ref, atol=1e-4, rtol=1e-4)

    # --- bf16 weight-storage run (f32 accumulation) --------------------------------
    params_bf16 = {k: (v.astype(jnp.bfloat16) if k in ("w1", "w2", "w3") else v)
                   for k, v in params.items()}
    q_bf16 = jax.block_until_ready(critic_maddpg_forward(s_list, a_list, params_bf16))
    assert jnp.allclose(q_bf16, q_ref, atol=5e-2, rtol=5e-2)

    # --- ragged batch (exercises multi-tile grid + batch pad + slice path) ---------
    kb = jax.random.PRNGKey(1)
    kbs = jax.random.split(kb, 2 * len(obs_dim_n))
    batch2 = 37
    s_list2 = [jax.random.normal(kbs[i], (batch2, d), jnp.float32)
               for i, d in enumerate(obs_dim_n)]
    a_list2 = [jax.random.normal(kbs[len(obs_dim_n) + i], (batch2, d), jnp.float32)
               for i, d in enumerate(action_dim_n)]
    q2 = jax.block_until_ready(critic_maddpg_forward(s_list2, a_list2, params))
    q2_ref = _reference(s_list2, a_list2, params)
    assert q2.shape == (batch2, 1)
    assert jnp.allclose(q2, q2_ref, atol=1e-4, rtol=1e-4)

    print("KERNEL_OK")
</pallas_src>

<mosaic_0001>
module attributes {stable_mosaic.version = 11 : i64} {
  func.func @_critic_kernel(%arg0: i32, %arg1: memref<8x24xf32, #tpu.memory_space<vmem>>, %arg2: memref<24x128xf32, #tpu.memory_space<vmem>>, %arg3: memref<1x128xf32, #tpu.memory_space<vmem>>, %arg4: memref<128x128xf32, #tpu.memory_space<vmem>>, %arg5: memref<1x128xf32, #tpu.memory_space<vmem>>, %arg6: memref<8x128xf32, #tpu.memory_space<vmem>>, %arg7: memref<1x1xf32, #tpu.memory_space<smem>>, %arg8: memref<1x1x8xf32, #tpu.memory_space<vmem>>) attributes {dimension_semantics = [#tpu.dimension_semantics<parallel>], iteration_bounds = array<i64: 1>, scalar_prefetch = 0 : i64, scratch_operands = 0 : i64, tpu.core_type = #tpu.core_type<tc>, window_params = [{transform_indices = @transform_0, window_bounds = array<i64: 8, 24>}, {pipeline_mode = #tpu.pipeline_mode<synchronous>, transform_indices = @transform_1, window_bounds = array<i64: 24, 128>}, {pipeline_mode = #tpu.pipeline_mode<synchronous>, transform_indices = @transform_2, window_bounds = array<i64: 1, 128>}, {pipeline_mode = #tpu.pipeline_mode<synchronous>, transform_indices = @transform_3, window_bounds = array<i64: 128, 128>}, {pipeline_mode = #tpu.pipeline_mode<synchronous>, transform_indices = @transform_4, window_bounds = array<i64: 1, 128>}, {pipeline_mode = #tpu.pipeline_mode<synchronous>, transform_indices = @transform_5, window_bounds = array<i64: 8, 128>}, {transform_indices = @transform_6, window_bounds = array<i64: 1, 1>}, {transform_indices = @transform_7, window_bounds = array<i64: 1, 1, 8>}]} {
    %c0 = arith.constant 0 : index
    %c0_0 = arith.constant 0 : index
    %0 = vector.load %arg1[%c0, %c0_0] : memref<8x24xf32, #tpu.memory_space<vmem>>, vector<8x24xf32>
    %c0_1 = arith.constant 0 : index
    %c0_2 = arith.constant 0 : index
    %1 = vector.load %arg2[%c0_1, %c0_2] : memref<24x128xf32, #tpu.memory_space<vmem>>, vector<24x128xf32>
    %cst = arith.constant dense<0.000000e+00> : vector<8x128xf32>
    %2 = tpu.matmul %0, %1, %cst {dimension_numbers = #tpu.dot_dimension_numbers<[1], [0], [0], [1], [0, 0, 1, 1], [], []>} : vector<8x24xf32>, vector<24x128xf32>, vector<8x128xf32> -> vector<8x128xf32>
    %c0_3 = arith.constant 0 : index
    %c0_4 = arith.constant 0 : index
    %3 = vector.load %arg3[%c0_3, %c0_4] : memref<1x128xf32, #tpu.memory_space<vmem>>, vector<1x128xf32>
    %4 = vector.broadcast %3 : vector<1x128xf32> to vector<8x128xf32>
    %5 = arith.addf %2, %4 : vector<8x128xf32>
    %cst_5 = arith.constant 0.000000e+00 : f32
    %6 = vector.broadcast %cst_5 : f32 to vector<8x128xf32>
    %7 = arith.maximumf %5, %6 : vector<8x128xf32>
    %c0_6 = arith.constant 0 : index
    %c0_7 = arith.constant 0 : index
    %8 = vector.load %arg4[%c0_6, %c0_7] : memref<128x128xf32, #tpu.memory_space<vmem>>, vector<128x128xf32>
    %cst_8 = arith.constant dense<0.000000e+00> : vector<8x128xf32>
    %9 = tpu.matmul %7, %8, %cst_8 {dimension_numbers = #tpu.dot_dimension_numbers<[1], [0], [0], [1], [0, 0, 1, 1], [], []>} : vector<8x128xf32>, vector<128x128xf32>, vector<8x128xf32> -> vector<8x128xf32>
    %c0_9 = arith.constant 0 : index
    %c0_10 = arith.constant 0 : index
    %10 = vector.load %arg5[%c0_9, %c0_10] : memref<1x128xf32, #tpu.memory_space<vmem>>, vector<1x128xf32>
    %11 = vector.broadcast %10 : vector<1x128xf32> to vector<8x128xf32>
    %12 = arith.addf %9, %11 : vector<8x128xf32>
    %cst_11 = arith.constant 0.000000e+00 : f32
    %13 = vector.broadcast %cst_11 : f32 to vector<8x128xf32>
    %14 = arith.maximumf %12, %13 : vector<8x128xf32>
    %c0_12 = arith.constant 0 : index
    %c0_13 = arith.constant 0 : index
    %15 = vector.load %arg6[%c0_12, %c0_13] : memref<8x128xf32, #tpu.memory_space<vmem>>, vector<8x128xf32>
    %cst_14 = arith.constant dense<0.000000e+00> : vector<8x8xf32>
    %16 = tpu.matmul %15, %14, %cst_14 {dimension_numbers = #tpu.dot_dimension_numbers<[1], [1], [0], [0], [0, 0, 1, 0], [], []>} : vector<8x128xf32>, vector<8x128xf32>, vector<8x8xf32> -> vector<8x8xf32>
    %17 = vector.extract_strided_slice %16 {offsets = [0, 0], sizes = [1, 8], strides = [1, 1]} : vector<8x8xf32> to vector<1x8xf32>
    %c0_15 = arith.constant 0 : index
    %c0_16 = arith.constant 0 : index
    %18 = memref.load %arg7[%c0_15, %c0_16] : memref<1x1xf32, #tpu.memory_space<smem>>
    %19 = vector.broadcast %18 : f32 to vector<1x8xf32>
    %20 = arith.addf %17, %19 : vector<1x8xf32>
    %21 = vector.shape_cast %20 : vector<1x8xf32> to vector<1x1x8xf32>
    %c0_17 = arith.constant 0 : index
    %c0_18 = arith.constant 0 : index
    %c0_19 = arith.constant 0 : index
    %22 = vector.load %arg8[%c0_17, %c0_18, %c0_19] : memref<1x1x8xf32, #tpu.memory_space<vmem>>, vector<1x1x8xf32>
    tpu.vector_store %arg8[%c0_17, %c0_18, %c0_19], %21 {strides = array<i32>} : memref<1x1x8xf32, #tpu.memory_space<vmem>>, vector<1x1x8xf32>,
    return
  }
  func.func @transform_0(%arg0: i32) -> (i32, i32) {
    %c0_i32 = arith.constant 0 : i32
    %c0_i32_0 = arith.constant 0 : i32
    return %arg0, %c0_i32 : i32, i32
  }
  func.func @transform_1(%arg0: i32) -> (i32, i32) {
    %c0_i32 = arith.constant 0 : i32
    %c0_i32_0 = arith.constant 0 : i32
    %c0_i32_1 = arith.constant 0 : i32
    return %c0_i32, %c0_i32_0 : i32, i32
  }
  func.func @transform_2(%arg0: i32) -> (i32, i32) {
    %c0_i32 = arith.constant 0 : i32
    %c0_i32_0 = arith.constant 0 : i32
    %c0_i32_1 = arith.constant 0 : i32
    return %c0_i32, %c0_i32_0 : i32, i32
  }
  func.func @transform_3(%arg0: i32) -> (i32, i32) {
    %c0_i32 = arith.constant 0 : i32
    %c0_i32_0 = arith.constant 0 : i32
    %c0_i32_1 = arith.constant 0 : i32
    return %c0_i32, %c0_i32_0 : i32, i32
  }
  func.func @transform_4(%arg0: i32) -> (i32, i32) {
    %c0_i32 = arith.constant 0 : i32
    %c0_i32_0 = arith.constant 0 : i32
    %c0_i32_1 = arith.constant 0 : i32
    return %c0_i32, %c0_i32_0 : i32, i32
  }
  func.func @transform_5(%arg0: i32) -> (i32, i32) {
    %c0_i32 = arith.constant 0 : i32
    %c0_i32_0 = arith.constant 0 : i32
    %c0_i32_1 = arith.constant 0 : i32
    return %c0_i32, %c0_i32_0 : i32, i32
  }
  func.func @transform_6(%arg0: i32) -> (i32, i32) {
    %c0_i32 = arith.constant 0 : i32
    %c0_i32_0 = arith.constant 0 : i32
    %c0_i32_1 = arith.constant 0 : i32
    return %c0_i32, %c0_i32_0 : i32, i32
  }
  func.func @transform_7(%arg0: i32) -> (i32, i32, i32) {
    %c0_i32 = arith.constant 0 : i32
    %c0_i32_0 = arith.constant 0 : i32
    %c0_i32_1 = arith.constant 0 : i32
    return %arg0, %c0_i32, %c0_i32_0 : i32, i32, i32
  }
}

</mosaic_0001>

<bundles_post_ra>
// kernel: tpu_custom_call.1
= control target key start
LH: loop header
LB: loop body
LE: loop exit
PB: predicated region body
PF: predicated region fallthrough
CT: control target
= control target key end

     0   :  { %13 = vsyncpa [#allocation4], 0  ;;  %s662_s0 = inlined_call_operand.hbm [shape: f32[8,24], index: 0, kind: input, shape index: {}]   ;;  %s663_s1 = inlined_call_operand.hbm [shape: f32[24,128], index: 1, kind: input, shape index: {}]   ;;  %s664_s2 = inlined_call_operand.vmem [shape: f32[1,128], index: 2, kind: input, shape index: {}]   ;;  %s665_s3 = inlined_call_operand.hbm [shape: f32[128,128], index: 3, kind: input, shape index: {}]   ;;  %s666_s4 = inlined_call_operand.vmem [shape: f32[1,128], index: 4, kind: input, shape index: {}]   ;;  %s667_s5 = inlined_call_operand.vmem [shape: f32[8,128], index: 5, kind: input, shape index: {}]   ;;  %s668_s6 = inlined_call_operand.<no memory space> [shape: f32[1,1], index: 6, kind: input, shape index: {}]   ;;  %s669_s7 = inlined_call_operand.hbm [shape: f32[1,1,8], index: 7, kind: output, shape index: {}]  }
   0x1   :  { %14 = vsyncpa [#allocation7], 0 }
   0x2   :  { %15 = vsyncpa [#allocation5], 0  ;;  %s544_s24 = smov [#allocation6]   ;;  %s450_s28 = scalar_lea.hbm %s663_s1, 384 }
   0x3   :  { %s31_s25 = sshll.u32 %s544_s24, 4  ;;  %p451_p0 = scmp.ne.s32.totalorder %s663_s1, %s450_s28  ;;  %s32_s25 = int_to_ptr.vmem [resolvable:$true] %s31_s25 }
   0x4   :  { %p454_p1 = scmp.lt.u32.totalorder %s450_s28, %s663_s1 }
   0x6   :  { %p456_p2 = pnand %p454_p1, %p451_p0 }
   0x8   :  { %459 = shalt.err (!%p456_p2)
}
   0x9   :  { %s460_s10 = scalar_lea.vmem %s32_s25, 384  ;;  %p465_p4 = scmp.lt.s32.totalorder %s32_s25, %s32_s25 }
   0xa   :  { %p461_p3 = scmp.ne.s32.totalorder %s32_s25, %s460_s10  ;;  %p466_p5 = scmp.lt.s32.totalorder %s460_s10, %s460_s10 }
   0xc   :  { %p467_p6 = por %p466_p5, %p465_p4 }
   0xe   :  { %p468_p7 = pnand %p467_p6, %p461_p3 }
  0x10   :  { %471 = shalt.err (!%p468_p7)
}
  0x11   :  { %s545_s11 = smov 128   ;;  %s546_s12 = smov 8  }
  0x12   :  { %37 = dma.hbm_to_vmem [thread:$0]  %s663_s1, 384, %s32_s25, [#allocation7], %s545_s11, %s545_s11, %s546_s12  }
  0x13   :  { %s547_s15 = smov [#allocation3]   ;;  %s548_s17 = smov [#allocation8]  }
  0x14   :  { %s22_s16 = sshll.u32 %s547_s15, 4  ;;  %s45_s18 = sshll.u32 %s548_s17, 4  ;;  %s23_s16 = int_to_ptr.vmem [resolvable:$true] %s22_s16  ;;  %s46_s18 = int_to_ptr.vmem [resolvable:$true] %s45_s18 }
  0x15   :  { %s472_s21 = scalar_lea.hbm %s662_s0, 128 }
  0x16   :  { %p473_p8 = scmp.ne.s32.totalorder %s662_s0, %s472_s21  ;;  %p476_p9 = scmp.lt.u32.totalorder %s472_s21, %s662_s0 }
  0x18   :  { %p478_p10 = pnand %p476_p9, %p473_p8 }
  0x1a   :  { %481 = shalt.err (!%p478_p10)
}
  0x1b   :  { %s482_s1 = scalar_lea.vmem %s23_s16, 128  ;;  %p487_p12 = scmp.lt.s32.totalorder %s23_s16, %s23_s16 }
  0x1c   :  { %p483_p11 = scmp.ne.s32.totalorder %s23_s16, %s482_s1  ;;  %p488_p13 = scmp.lt.s32.totalorder %s482_s1, %s482_s1 }
  0x1e   :  { %p489_p0 = por %p488_p13, %p487_p12 }
  0x20   :  { %p490_p1 = pnand %p489_p0, %p483_p11 }
  0x22   :  { %493 = shalt.err (!%p490_p1)
}
  0x23   :  { %25 = dma.hbm_to_vmem [thread:$0]  %s662_s0, 128, %s23_s16, [#allocation4]  }
  0x24   :  { %s494_s30 = scalar_lea.hbm %s665_s3, 2048 }
  0x25   :  { %p495_p2 = scmp.ne.s32.totalorder %s665_s3, %s494_s30  ;;  %p498_p3 = scmp.lt.u32.totalorder %s494_s30, %s665_s3 }
  0x27   :  { %p500_p4 = pnand %p498_p3, %p495_p2 }
  0x29   :  { %503 = shalt.err (!%p500_p4)
}
  0x2a   :  { %s504_s14 = scalar_lea.vmem %s46_s18, 2048  ;;  %p509_p6 = scmp.lt.s32.totalorder %s46_s18, %s46_s18 }
  0x2b   :  { %p505_p5 = scmp.ne.s32.totalorder %s46_s18, %s504_s14  ;;  %p510_p7 = scmp.lt.s32.totalorder %s504_s14, %s504_s14 }
  0x2d   :  { %p511_p8 = por %p510_p7, %p509_p6 }
  0x2f   :  { %p512_p9 = pnand %p511_p8, %p505_p5 }
  0x31   :  { %515 = shalt.err (!%p512_p9)
}
  0x32   :  { %51 = dma.hbm_to_vmem [thread:$0]  %s665_s3, 2048, %s46_s18, [#allocation7], %s545_s11, %s545_s11, %s546_s12  }
  0x33   :  { %538 = dma.done.wait [#allocation4], 128  }
  0x34   :  { %539 = vsyncadd [#allocation4], 4294967168 }
  0x35   :  { %540 = dma.done.wait [#allocation7], 2432  }
  0x36   :  { %541 = vsyncadd [#allocation7], 4294964864  ;;  %v549_v0 = vmov 0.0|0.0   ;;  %vm550_vm0 = vmmov 0   ;;  %v551_v1 = vmov 0.0   ;;  %v68_v2 = vld [vmem:[#allocation6] sm:$0xff]  ;;  %v319_v42 = vstv %s668_s6 }
  0x37   :  { %414 = vmatprep.subr.bf16.mxu0 %v549_v0  ;;  %371 = vmatprep.mubr.msk.f32.mxu0 %vm550_vm0, %v551_v1  ;;  %v69_v3 = vld [vmem:[#allocation6 + $0x8] sm:$0xff]  ;;  %v153_v5 = vld [vmem:[#allocation8] sm:$0xff]  ;;  %v154_v6 = vld [vmem:[#allocation8 + $0x8] sm:$0xff]  ;;  %vm78_vm1 = vcmask 195584   ;;  %s552_s20 = smov [#allocation9]   ;;  %vm321_vm2 = vcmask 57344  }
  0x38   :  { %417 = vmatprep.subr.bf16.mxu1 %v549_v0  ;;  %406 = vmatprep.mubr.msk.f32.mxu1 %vm550_vm0, %v551_v1  ;;  %v415_v4 = vpack.c.bf16 %v69_v3, %v68_v2  ;;  %v418_v7 = vpack.c.bf16 %v154_v6, %v153_v5  ;;  %v155_v8 = vld [vmem:[#allocation8 + $0x10] sm:$0xff]  ;;  %v156_v9 = vld [vmem:[#allocation8 + $0x18] sm:$0xff]  ;;  %v67_v12 = vld [vmem:[#allocation3] sm:$0xff]  ;;  %s329_s21 = sshll.u32 %s552_s20, 4  ;;  %s330_s21 = int_to_ptr.vmem [resolvable:$true] %s329_s21 }
  0x39   :  { %v70_v10 = vld [vmem:[#allocation6 + $0x10] sm:$0xff]  ;;  %v421_v11 = vpack.c.bf16 %v156_v9, %v155_v8  ;;  %v157_v13 = vld [vmem:[#allocation8 + $0x20] sm:$0xff]  ;;  %v158_v14 = vld [vmem:[#allocation8 + $0x28] sm:$0xff]  ;;  %s520_s22 = scalar_lea.vmem %s330_s21, 32  ;;  %p521_p11 = scmp.lt.s32.totalorder %s330_s21, %s330_s21 }
  0x3a   :  { %416 = vmatpush3.bf16.msra.mxu0 %v415_v4  ;;  %419 = vmatpush3.bf16.msra.mxu1 %v418_v7  ;;  %v424_v15 = vpack.c.bf16 %v158_v14, %v157_v13  ;;  %v159_v16 = vld [vmem:[#allocation8 + $0x30] sm:$0xff]  ;;  %v160_v17 = vld [vmem:[#allocation8 + $0x38] sm:$0xff]  ;;  %v161_v19 = vld [vmem:[#allocation8 + $0x40] sm:$0xff] }
  0x3b   :  { %369 = vmatprep.subr.mxu0 %v551_v1  ;;  %420 = vmatprep.subr.bf16.mxu1 %v549_v0  ;;  %v427_v18 = vpack.c.bf16 %v160_v17, %v159_v16  ;;  %v162_v20 = vld [vmem:[#allocation8 + $0x48] sm:$0xff]  ;;  %v163_v22 = vld [vmem:[#allocation8 + $0x50] sm:$0xff]  ;;  %v164_v23 = vld [vmem:[#allocation8 + $0x58] sm:$0xff] }
  0x3c   :  { %v430_v21 = vpack.c.bf16 %v162_v20, %v161_v19  ;;  %v433_v24 = vpack.c.bf16 %v164_v23, %v163_v22  ;;  %v165_v25 = vld [vmem:[#allocation8 + $0x60] sm:$0xff]  ;;  %v166_v26 = vld [vmem:[#allocation8 + $0x68] sm:$0xff]  ;;  %v167_v28 = vld [vmem:[#allocation8 + $0x70] sm:$0xff] }
  0x3d   :  { %v436_v27 = vpack.c.bf16 %v166_v26, %v165_v25  ;;  %v168_v29 = vld [vmem:[#allocation8 + $0x78] sm:$0xff]  ;;  %v339_v31 = vld [vmem:[%s664_s2] ss:$0 sm:$0xff] }
  0x3e   :  { %370 = vmatpush3.msra.mxu0 %v70_v10  ;;  %422 = vmatpush3.bf16.msra.mxu1 %v421_v11  ;;  %v439_v30 = vpack.c.bf16 %v168_v29, %v167_v28  ;;  %v341_v36 = vld [vmem:[%s666_s4] ss:$0 sm:$0xff]  ;;  %s516_s4 = scalar_lea.vmem %s330_s21, 16 }
  0x3f   :  { %372 = vmatmul.mubr.msk.f32.vlgmr.msra.gmra.mrb[0].mxu0 %vm78_vm1, %v67_v12  ;;  %423 = vmatprep.subr.bf16.mxu1 %v549_v0  ;;  %v247_v41 = vld [vmem:[%s667_s5] sm:$0xff]  ;;  %p517_p10 = scmp.ne.s32.totalorder %s330_s21, %s516_s4  ;;  %p522_p12 = scmp.lt.s32.totalorder %s520_s22, %s516_s4 }
  0x40   :  { %409 = vmatprep.subr.mxu0 %v551_v1  ;;  %411 = vmatprep.mubr.msk.f32.mxu0 %vm550_vm0, %v551_v1 }
  0x41   :  { %p523_p13 = por %p522_p12, %p521_p11 }
  0x42   :  { %425 = vmatpush3.bf16.msra.mxu1 %v424_v15 }
  0x43   :  { %426 = vmatprep.subr.bf16.mxu1 %v549_v0  ;;  %p524_p0 = pnand %p523_p13, %p517_p10 }
  0x46   :  { %428 = vmatpush3.bf16.msra.mxu1 %v427_v18 }
  0x47   :  { %429 = vmatprep.subr.bf16.mxu1 %v549_v0 }
  0x4a   :  { %431 = vmatpush3.bf16.msra.mxu1 %v430_v21 }
  0x4b   :  { %432 = vmatprep.subr.bf16.mxu1 %v549_v0 }
  0x4e   :  { %434 = vmatpush3.bf16.msra.mxu1 %v433_v24 }
  0x4f   :  { %435 = vmatprep.subr.bf16.mxu1 %v549_v0 }
  0x52   :  { %437 = vmatpush3.bf16.msra.mxu1 %v436_v27 }
  0x53   :  { %438 = vmatprep.subr.bf16.mxu1 %v549_v0 }
  0x56   :  { %440 = vmatpush3.bf16.msra.mxu1 %v439_v30 }
 0x112   :  { %v148_v32 = vpop.f32.mrb[0].mxu0 }
 0x113   :  { %v149_v33 = vadd.f32 %v339_v31, %v148_v32  ;;  %v373_v34 = vpop.f32.mrb[1].mxu0 }
 0x115   :  { %v152_v35 = vmax.f32 %v149_v33, 0.0 }
 0x117   :  { %407 = vmatmul.mubr.f32.vlgmr.msra.gmra.mrb[0].mxu1 %v152_v35 }
 0x1ea   :  { %v242_v37 = vpop.f32.mrb[0].mxu1 }
 0x1eb   :  { %v243_v38 = vadd.f32 %v341_v36, %v242_v37  ;;  %v408_v39 = vpop.f32.mrb[1].mxu1 }
 0x1ed   :  { %v246_v40 = vmax.f32 %v243_v38, 0.0 }
 0x1ef   :  { %410 = vmatpush3.xpose.msra.mxu0 %v246_v40 }
 0x1f2   :  { %412 = vmatmul.mubr.f32.vlgmr.msra.gmra.mrb[2].mxu0 %v247_v41 }
 0x2c5   :  { %v314_v43 = vpop.f32.mrb[2].mxu0 }
 0x2c6   :  { %v320_v44 = vadd.f32 %v319_v42, %v314_v43  ;;  %v413_v45 = vpop.f32.mrb[3].mxu0 }
 0x2c8   :  { %322 = vst.msk [vmem:[#allocation9] sm:$0x1] %vm321_vm2, %v320_v44 }
 0x2c9   :  { %527 = shalt.err (!%p524_p0)
}
 0x2ca   :  { %s528_s6 = scalar_lea.hbm %s669_s7, 16 }
 0x2cb   :  { %p529_p1 = scmp.ne.s32.totalorder %s669_s7, %s528_s6  ;;  %p532_p2 = scmp.lt.u32.totalorder %s528_s6, %s669_s7 }
 0x2cd   :  { %p534_p3 = pnand %p532_p2, %p529_p1 }
 0x2cf   :  { %537 = shalt.err (!%p534_p3)
}
 0x2d0   :  { %332 = dma.vmem_to_hbm [thread:$0]  %s330_s21, 16, %s669_s7, [#allocation5]  }
 0x2d1   :  { %542 = dma.done.wait [#allocation5], 16  }
 0x2d2   :  { %543 = vsyncadd [#allocation5], 4294967280 }
 0x2d3   :  { %336 = vsyncpa [#allocation4], 1 }
 0x2d4   :  { %337 = vsyncpa [#allocation7], 1 }
 0x2d5   :  { %338 = vsyncpa [#allocation5], 1 }

</bundles_post_ra>
